<compile_context>
chip_gen: v7x
topology: tpu7x:2x2x1
jax: 0.10.0
libtpu: 0.0.40
codegen_flags: <defaults>
</compile_context>

<pallas_src>
from typing import NamedTuple, Optional

import jax
import jax.numpy as jnp
import numpy as np
from jax.experimental import pallas as pl
from jax.experimental.pallas import tpu as pltpu

_LANE = 128


def _round_up(v, m):
    return ((v + m - 1) // m) * m


def _sublane_multiple(dtype):
    # 8 sublanes per f32 vreg; sub-32-bit dtypes pack along sublanes.
    return max(8, 32 // jnp.dtype(dtype).itemsize)


def _vmem_budget_bytes():
    """Generation-aware VMEM budget (~70% of physical capacity)."""
    cap = 64 * 1024 * 1024  # conservative fallback (v7x physical per TC)
    try:
        info = pltpu.get_tpu_info()
        cap = int(getattr(info, "vmem_capacity_bytes", cap)) or cap
    except Exception:
        pass
    return max(16 * 1024 * 1024, int(cap * 0.70))


_MEGACORE_CACHE = None


def _has_megacore():
    """Best-effort detection of chips with >1 TensorCore per device."""
    global _MEGACORE_CACHE
    if _MEGACORE_CACHE is None:
        try:
            kind = jax.devices()[0].device_kind.lower()
            _MEGACORE_CACHE = any(t in kind for t in ("v4", "v7", "7x"))
        except Exception:
            _MEGACORE_CACHE = False
    return _MEGACORE_CACHE


def _choose_tiles(m, k_pad, n_pad, x_bytes, w_bytes, out_bytes, sub, tile_m, budget):
    """Pick (tm, tn) so everything fits the VMEM budget."""
    headroom = 2 * 1024 * 1024

    def footprint(tm, tn):
        # Pallas allocates buffer_count (=2) copies of every BlockSpec operand,
        # even with a constant index_map, so count the weight/bias at 2x.
        resident = 2 * tn * (k_pad * w_bytes + 4)                 # weight + bias
        streamed = 2 * tm * (k_pad * x_bytes + tn * out_bytes)    # x / out tiles
        return resident + streamed + headroom

    # N tile: prefer the full (lane-dense) n_pad; shrink 256-granular (MXU is
    # 256 wide on v6e/v7x) only if the resident weight slab is too big.
    tn = n_pad
    while tn > _LANE and footprint(sub, tn) > budget:
        step = 256 if tn > 256 else _LANE
        tn = max(_LANE, _round_up(tn // 2, step))

    # M tile: as large as allowed, multiple of the packed-sublane count.
    tm = min(_round_up(max(m, 1), sub), max(sub, _round_up(int(tile_m), sub)))
    while tm > sub and footprint(tm, tn) > budget:
        tm = max(sub, _round_up(tm // 2, sub))

    if footprint(tm, tn) > budget:
        # TODO(synk): requires the K-axis reduction grid (accumulator) path.
        raise ValueError(
            f"EqualLinear weight slice (k_pad={k_pad}, tn={tn}) does not fit "
            f"the VMEM budget ({budget} bytes) even at minimal tiling.")
    return tm, tn


# --------------------------------------------------------------------------
# Kernels: x(tm,K) @ w(K,tn) -> (tm,tn), f32 accumulation, fused bias epilogue.
# `scale` is already folded into w and `lr_mul` into the bias at prepare time.
# --------------------------------------------------------------------------
def _linear_bias_kernel(x_ref, w_ref, b_ref, o_ref):
    acc = jnp.dot(x_ref[...], w_ref[...], preferred_element_type=jnp.float32)
    o_ref[...] = (acc + b_ref[...]).astype(o_ref.dtype)


def _linear_nobias_kernel(x_ref, w_ref, o_ref):
    acc = jnp.dot(x_ref[...], w_ref[...], preferred_element_type=jnp.float32)
    o_ref[...] = acc.astype(o_ref.dtype)


# --------------------------------------------------------------------------
# Single-head EqualLinear
# --------------------------------------------------------------------------
class EqualLinearParams(NamedTuple):
    w_kn: jax.Array                 # (k_pad, n_pad) = (weight * scale).T, zero padded
    bias: Optional[jax.Array]       # (1, n_pad) f32, already * lr_mul, or None
    in_features: int
    out_features: int


def prepare_equal_linear_params(weight, bias=None, *, lr_mul=1.0, weight_dtype=None):
    """One-time weight preprocessing. Cache the result; call *_apply per step."""
    n, k = weight.shape
    scale = float(1.0 / np.sqrt(k) * lr_mul)
    w_dtype = weight.dtype if weight_dtype is None else jnp.dtype(weight_dtype)
    w_kn = (weight.astype(jnp.float32) * scale).astype(w_dtype).T       # (k, n)
    k_pad, n_pad = _round_up(k, _LANE), _round_up(n, _LANE)
    if (k_pad, n_pad) != (k, n):
        w_kn = jnp.pad(w_kn, ((0, k_pad - k), (0, n_pad - n)))
    b2d = None
    if bias is not None:
        b2d = (bias.astype(jnp.float32) * lr_mul).reshape(1, n)
        if n_pad != n:
            b2d = jnp.pad(b2d, ((0, 0), (0, n_pad - n)))
    return EqualLinearParams(w_kn, b2d, k, n)


def equal_linear_apply(x, params: EqualLinearParams, *, tile_m=512):
    k, n = params.in_features, params.out_features
    if x.shape[-1] != k:
        raise ValueError(f"expected trailing dim {k}, got {x.shape}")
    lead_shape = x.shape[:-1]
    x2d = x.reshape(-1, k)
    m = x2d.shape[0]
    k_pad, n_pad = params.w_kn.shape
    if k_pad != k:
        x2d = jnp.pad(x2d, ((0, 0), (0, k_pad - k)))   # zeros -> exact

    sub = _sublane_multiple(x2d.dtype)
    budget = _vmem_budget_bytes()
    x_bytes = jnp.dtype(x2d.dtype).itemsize
    w_bytes = jnp.dtype(params.w_kn.dtype).itemsize
    tm, tn = _choose_tiles(m, k_pad, n_pad, x_bytes, w_bytes, x_bytes,
                           sub, tile_m, budget)

    # Megacore (v7x): make sure the grid has >= 2 parallel steps.
    if _has_megacore() and tn >= n_pad and m > sub and pl.cdiv(m, tm) == 1:
        tm = _round_up(pl.cdiv(m, 2), sub)

    grid = (pl.cdiv(n_pad, tn), pl.cdiv(m, tm))

    x_spec = pl.BlockSpec((tm, k_pad), lambda nb, mb: (mb, 0))
    w_spec = pl.BlockSpec((k_pad, tn), lambda nb, mb: (0, nb))
    o_spec = pl.BlockSpec((tm, tn), lambda nb, mb: (mb, nb))
    out_shape = jax.ShapeDtypeStruct((m, n_pad), x2d.dtype)

    cost = pl.CostEstimate(
        flops=2 * m * n_pad * k_pad,
        transcendentals=0,
        bytes_accessed=(x2d.size * x_bytes + params.w_kn.size * w_bytes
                        + m * n_pad * x_bytes))
    cparams = pltpu.CompilerParams(
        dimension_semantics=("parallel", "parallel"),
        vmem_limit_bytes=int(budget))

    if params.bias is not None:
        b_spec = pl.BlockSpec((1, tn), lambda nb, mb: (0, nb))
        out = pl.pallas_call(
            _linear_bias_kernel, out_shape=out_shape, grid=grid,
            in_specs=[x_spec, w_spec, b_spec], out_specs=o_spec,
            compiler_params=cparams, cost_estimate=cost,
        )(x2d, params.w_kn, params.bias)
    else:
        out = pl.pallas_call(
            _linear_nobias_kernel, out_shape=out_shape, grid=grid,
            in_specs=[x_spec, w_spec], out_specs=o_spec,
            compiler_params=cparams, cost_estimate=cost,
        )(x2d, params.w_kn)

    if n_pad != n:
        out = out[:, :n]
    return out.reshape(*lead_shape, n)


def equal_linear(x, weight, bias=None, *, lr_mul=1.0, tile_m=512):
    """One-shot convenience wrapper (prefer prepare_* + *_apply and cache)."""
    params = prepare_equal_linear_params(weight, bias, lr_mul=lr_mul)
    return equal_linear_apply(x, params, tile_m=tile_m)


# --------------------------------------------------------------------------
# Batched multi-head EqualLinear: all PadInvEncoder latent heads in one call.
# --------------------------------------------------------------------------
class BatchedEqualLinearParams(NamedTuple):
    w_kn: jax.Array                 # (H, k_pad, n_pad)
    bias: Optional[jax.Array]       # (H, 1, n_pad) f32, already * lr_mul
    in_features: int
    out_features: int


def prepare_batched_equal_linear_params(weights, biases=None, *, lr_mul=1.0,
                                        weight_dtype=None):
    """Stack H same-shaped EqualLinear heads; do all weight prep once."""
    w = weights if (hasattr(weights, "ndim") and weights.ndim == 3) \
        else jnp.stack(list(weights), axis=0)                         # (H, N, K)
    h, n, k = w.shape
    scale = float(1.0 / np.sqrt(k) * lr_mul)
    w_dtype = w.dtype if weight_dtype is None else jnp.dtype(weight_dtype)
    w_kn = jnp.transpose((w.astype(jnp.float32) * scale).astype(w_dtype),
                         (0, 2, 1))                                    # (H, K, N)
    k_pad, n_pad = _round_up(k, _LANE), _round_up(n, _LANE)
    if (k_pad, n_pad) != (k, n):
        w_kn = jnp.pad(w_kn, ((0, 0), (0, k_pad - k), (0, n_pad - n)))
    b3d = None
    if biases is not None:
        b = biases if (hasattr(biases, "ndim") and biases.ndim == 2) \
            else jnp.stack(list(biases), axis=0)                       # (H, N)
        b3d = (b.astype(jnp.float32) * lr_mul).reshape(h, 1, n)
        if n_pad != n:
            b3d = jnp.pad(b3d, ((0, 0), (0, 0), (0, n_pad - n)))
    return BatchedEqualLinearParams(w_kn, b3d, k, n)


def batched_equal_linear_apply(x, params: BatchedEqualLinearParams, *, tile_m=512):
    """x: (H, ..., K) per-head inputs stacked on the leading axis -> (H, ..., N)."""
    k, n = params.in_features, params.out_features
    h, k_pad, n_pad = params.w_kn.shape
    if x.shape[0] != h or x.shape[-1] != k:
        raise ValueError(f"expected (H={h}, ..., K={k}), got {x.shape}")
    lead_shape = x.shape[1:-1]
    x3d = x.reshape(h, -1, k)
    m = x3d.shape[1]
    if k_pad != k:
        x3d = jnp.pad(x3d, ((0, 0), (0, 0), (0, k_pad - k)))

    sub = _sublane_multiple(x3d.dtype)
    budget = _vmem_budget_bytes()
    x_bytes = jnp.dtype(x3d.dtype).itemsize
    w_bytes = jnp.dtype(params.w_kn.dtype).itemsize
    tm, tn = _choose_tiles(m, k_pad, n_pad, x_bytes, w_bytes, x_bytes,
                           sub, tile_m, budget)

    grid = (h, pl.cdiv(n_pad, tn), pl.cdiv(m, tm))

    x_spec = pl.BlockSpec((pl.Squeezed(), tm, k_pad), lambda hb, nb, mb: (hb, mb, 0))
    w_spec = pl.BlockSpec((pl.Squeezed(), k_pad, tn), lambda hb, nb, mb: (hb, 0, nb))
    o_spec = pl.BlockSpec((pl.Squeezed(), tm, tn), lambda hb, nb, mb: (hb, mb, nb))
    out_shape = jax.ShapeDtypeStruct((h, m, n_pad), x3d.dtype)

    cost = pl.CostEstimate(
        flops=2 * h * m * n_pad * k_pad,
        transcendentals=0,
        bytes_accessed=(x3d.size * x_bytes + params.w_kn.size * w_bytes
                        + h * m * n_pad * x_bytes))
    cparams = pltpu.CompilerParams(
        dimension_semantics=("parallel", "parallel", "parallel"),
        vmem_limit_bytes=int(budget))

    if params.bias is not None:
        b_spec = pl.BlockSpec((pl.Squeezed(), 1, tn), lambda hb, nb, mb: (hb, 0, nb))
        out = pl.pallas_call(
            _linear_bias_kernel, out_shape=out_shape, grid=grid,
            in_specs=[x_spec, w_spec, b_spec], out_specs=o_spec,
            compiler_params=cparams, cost_estimate=cost,
        )(x3d, params.w_kn, params.bias)
    else:
        out = pl.pallas_call(
            _linear_nobias_kernel, out_shape=out_shape, grid=grid,
            in_specs=[x_spec, w_spec], out_specs=o_spec,
            compiler_params=cparams, cost_estimate=cost,
        )(x3d, params.w_kn)

    if n_pad != n:
        out = out[..., :n]
    return out.reshape(h, *lead_shape, n)


# --------------------------------------------------------------------------
# Demo / correctness checks
# --------------------------------------------------------------------------
if __name__ == "__main__":
    keys = jax.random.split(jax.random.PRNGKey(0), 8)

    # ---- Test A: all latent heads of PadInvEncoder in one batched call ----
    # PadInvEncoder runs H Map2StyleCodeHead heads, each ending in an
    # EqualLinear(dim, dim) on a (batch, dim) input. Scaled-down: H=6,
    # batch=2, dim=64 (instead of 14-18 heads at dim=512).
    H, batch, dim = 6, 2, 64
    lr_mul = 1.0
    xh = jax.random.normal(keys[0], (H, batch, dim), dtype=jnp.float32)
    wh = jax.random.normal(keys[1], (H, dim, dim), dtype=jnp.float32) / lr_mul
    bh = 0.1 * jax.random.normal(keys[2], (H, dim), dtype=jnp.float32)

    head_params = prepare_batched_equal_linear_params(wh, bh, lr_mul=lr_mul)
    codes = jax.block_until_ready(batched_equal_linear_apply(xh, head_params))

    scale = 1.0 / np.sqrt(dim) * lr_mul
    ref = (np.einsum("hmk,hnk->hmn", np.asarray(xh, np.float64),
                     np.asarray(wh, np.float64) * scale)
           + (np.asarray(bh, np.float64) * lr_mul)[:, None, :])
    np.testing.assert_allclose(np.asarray(codes), ref, rtol=2e-4, atol=2e-4)

    # ---- Test B: single head, unaligned K/N, boundary M block, lr_mul != 1 ----
    m2, in2, out2 = 37, 96, 160
    lr2 = 0.01
    x2 = jax.random.normal(keys[3], (m2, in2), dtype=jnp.float32)
    w2 = jax.random.normal(keys[4], (out2, in2), dtype=jnp.float32) / lr2
    b2 = jnp.full((out2,), 0.5, dtype=jnp.float32)
    out2_val = jax.block_until_ready(equal_linear(x2, w2, b2, lr_mul=lr2))
    scale2 = 1.0 / np.sqrt(in2) * lr2
    ref2 = (np.asarray(x2, np.float64) @ (np.asarray(w2, np.float64) * scale2).T
            + np.asarray(b2, np.float64) * lr2)
    np.testing.assert_allclose(np.asarray(out2_val), ref2, rtol=2e-4, atol=2e-4)

    # ---- Test C: single head, no bias ----
    m3, in3, out3 = 20, 128, 128
    x3 = jax.random.normal(keys[5], (m3, in3), dtype=jnp.float32)
    w3 = jax.random.normal(keys[6], (out3, in3), dtype=jnp.float32)
    out3_val = jax.block_until_ready(equal_linear(x3, w3, None, lr_mul=1.0))
    ref3 = np.asarray(x3, np.float64) @ (np.asarray(w3, np.float64) / np.sqrt(in3)).T
    np.testing.assert_allclose(np.asarray(out3_val), ref3, rtol=2e-4, atol=2e-4)

    print("KERNEL_OK")
</pallas_src>

<mosaic_0001>
module attributes {stable_mosaic.version = 11 : i64} {
  func.func @_linear_bias_kernel(%arg0: i32, %arg1: i32, %arg2: i32, %arg3: memref<1x8x128xf32, #tpu.memory_space<vmem>>, %arg4: memref<1x128x128xf32, #tpu.memory_space<vmem>>, %arg5: memref<1x1x128xf32, #tpu.memory_space<vmem>>, %arg6: memref<1x8x128xf32, #tpu.memory_space<vmem>>) attributes {dimension_semantics = [#tpu.dimension_semantics<parallel>, #tpu.dimension_semantics<parallel>, #tpu.dimension_semantics<parallel>], iteration_bounds = array<i64: 6, 1, 1>, scalar_prefetch = 0 : i64, scratch_operands = 0 : i64, tpu.core_type = #tpu.core_type<tc>, window_params = [{transform_indices = @transform_0, window_bounds = array<i64: 1, 8, 128>}, {transform_indices = @transform_1, window_bounds = array<i64: 1, 128, 128>}, {transform_indices = @transform_2, window_bounds = array<i64: 1, 1, 128>}, {transform_indices = @transform_3, window_bounds = array<i64: 1, 8, 128>}]} {
    %c0 = arith.constant 0 : index
    %c0_0 = arith.constant 0 : index
    %c0_1 = arith.constant 0 : index
    %0 = vector.load %arg3[%c0, %c0_0, %c0_1] : memref<1x8x128xf32, #tpu.memory_space<vmem>>, vector<1x8x128xf32>
    %1 = vector.shape_cast %0 : vector<1x8x128xf32> to vector<8x128xf32>
    %c0_2 = arith.constant 0 : index
    %c0_3 = arith.constant 0 : index
    %c0_4 = arith.constant 0 : index
    %2 = vector.load %arg4[%c0_2, %c0_3, %c0_4] : memref<1x128x128xf32, #tpu.memory_space<vmem>>, vector<1x128x128xf32>
    %3 = vector.shape_cast %2 : vector<1x128x128xf32> to vector<128x128xf32>
    %cst = arith.constant dense<0.000000e+00> : vector<8x128xf32>
    %4 = tpu.matmul %1, %3, %cst {dimension_numbers = #tpu.dot_dimension_numbers<[1], [0], [0], [1], [0, 0, 1, 1], [], []>} : vector<8x128xf32>, vector<128x128xf32>, vector<8x128xf32> -> vector<8x128xf32>
    %c0_5 = arith.constant 0 : index
    %c0_6 = arith.constant 0 : index
    %c0_7 = arith.constant 0 : index
    %5 = vector.load %arg5[%c0_5, %c0_6, %c0_7] : memref<1x1x128xf32, #tpu.memory_space<vmem>>, vector<1x1x128xf32>
    %6 = vector.shape_cast %5 : vector<1x1x128xf32> to vector<1x128xf32>
    %7 = vector.broadcast %6 : vector<1x128xf32> to vector<8x128xf32>
    %8 = arith.addf %4, %7 : vector<8x128xf32>
    %c0_8 = arith.constant 0 : index
    %c0_9 = arith.constant 0 : index
    %c0_10 = arith.constant 0 : index
    %9 = vector.load %arg6[%c0_8, %c0_9, %c0_10] : memref<1x8x128xf32, #tpu.memory_space<vmem>>, vector<1x8x128xf32>
    %10 = vector.shape_cast %9 : vector<1x8x128xf32> to vector<8x128xf32>
    %11 = vector.shape_cast %8 : vector<8x128xf32> to vector<1x8x128xf32>
    tpu.vector_store %arg6[%c0_8, %c0_9, %c0_10], %11 {strides = array<i32>} : memref<1x8x128xf32, #tpu.memory_space<vmem>>, vector<1x8x128xf32>,
    return
  }
  func.func @transform_0(%arg0: i32, %arg1: i32, %arg2: i32) -> (i32, i32, i32) {
    %c0_i32 = arith.constant 0 : i32
    %c0_i32_0 = arith.constant 0 : i32
    return %arg0, %arg2, %c0_i32 : i32, i32, i32
  }
  func.func @transform_1(%arg0: i32, %arg1: i32, %arg2: i32) -> (i32, i32, i32) {
    %c0_i32 = arith.constant 0 : i32
    %c0_i32_0 = arith.constant 0 : i32
    return %arg0, %c0_i32, %arg1 : i32, i32, i32
  }
  func.func @transform_2(%arg0: i32, %arg1: i32, %arg2: i32) -> (i32, i32, i32) {
    %c0_i32 = arith.constant 0 : i32
    %c0_i32_0 = arith.constant 0 : i32
    return %arg0, %c0_i32, %arg1 : i32, i32, i32
  }
  func.func @transform_3(%arg0: i32, %arg1: i32, %arg2: i32) -> (i32, i32, i32) {
    %c0_i32 = arith.constant 0 : i32
    return %arg0, %arg2, %arg1 : i32, i32, i32
  }
}

</mosaic_0001>

<bundles_post_ra>
// kernel: tpu_custom_call.1
= control target key start
LH: loop header
LB: loop body
LE: loop exit
PB: predicated region body
PF: predicated region fallthrough
CT: control target
= control target key end

     0   :  { %8 = vsyncpa [#allocation3], 0  ;;  %s1076_s0 = inlined_call_operand.hbm [shape: f32[6,2,128], index: 0, kind: input, shape index: {}]   ;;  %s1077_s1 = inlined_call_operand.hbm [shape: f32[6,128,128], index: 1, kind: input, shape index: {}]   ;;  %s1078_s2 = inlined_call_operand.vmem [shape: f32[6,1,128], index: 2, kind: input, shape index: {}]   ;;  %s1079_s3 = inlined_call_operand.hbm [shape: f32[6,2,128], index: 3, kind: output, shape index: {}]  }
   0x1   :  { %10 = vsyncpa [#allocation3 + $0x1], 0 }
   0x2   :  { %11 = vsyncpa [#allocation6], 0 }
   0x3   :  { %13 = vsyncpa [#allocation6 + $0x1], 0 }
   0x4   :  { %14 = vsyncpa [#allocation4], 0 }
   0x5   :  { %16 = vsyncpa [#allocation4 + $0x1], 0  ;;  %s863_s12 = smov 0   ;;  %s865_s13 = smov 0  }
   0x6   :  { %s867_s14 = smov 0   ;;  %s869_s15 = smov 0  }
   0x7   :  { %s871_s16 = smov 0   ;;  %s873_s17 = smov 0  }
   0x8 LB: > { %s534_s18 = sadd.s32 4294967295, %s829_s17   ;;  %s535_s19 = sadd.s32 4294967294, %s829_s17   ;;  %s829_s17 = sphi %s873_s17, %s22_s17   ;;  %s825_s16 = sphi %s871_s16, %s1090_s16   ;;  %s821_s15 = sphi %s869_s15, %s1089_s15   ;;  %s817_s14 = sphi %s867_s14, %s1088_s14   ;;  %s813_s13 = sphi %s865_s13, %s1087_s13   ;;  %s809_s12 = sphi %s863_s12, %s1086_s12  }
   0x9   : > { %s41_s20 = sadd.s32 1, %s825_s16  ;;  %s50_s21 = sadd.s32 1, %s817_s14 }
   0xa   : > { %p43_p0 = scmp.ge.s32.totalorder %s41_s20, 6  ;;  %p57_p1 = scmp.ne.s32.totalorder %s817_s14, %s813_s13 }
   0xb   : > { %p58_p2 = scmp.eq.s32.totalorder %s829_s17, 0  ;;  %p63_p3 = scmp.ne.s32.totalorder %s813_s13, %s809_s12 }
   0xc   : > { %s1092_s20 = smov (%p43_p0, %s41_s20), 0  ;;  %p64_p5 = scmp.eq.s32.totalorder %s534_s18, 0 }
   0xd   : > { %p904_p4 = por %p58_p2, %p57_p1  ;;  %s45_s23 = ssub.s32 %s825_s16, %s1092_s20 }
   0xe   : > { %p147_p6 = scmp.eq.s32.totalorder %s534_s18, 5  ;;  %p48_p7 = scmp.eq.s32.totalorder %s45_s23, 0 }
   0xf   : > { %p910_p8 = por %p64_p5, %p63_p3  ;;  %p153_p10 = scmp.eq.s32.totalorder %s535_s19, 5 }
  0x10   : > { %p914_p9 = por %p147_p6, %p57_p1  ;;  %p537_p12 = scmp.ge.s32.totalorder %s829_s17, 6 }
  0x11   : > { %s919_s26 = scalar_select %p48_p7, %s817_s14, %s50_s21  }
  0x12   : > { %s1082_s25 = scalar_select %p914_p9, 1, 0 }
  0x13   : > { %p921_p11 = por %p153_p10, %p63_p3  ;;  %169 = sbr.rel (%p537_p12) target bundleno = 83 (0x53), region = 16 }
  0x15   : > { %s1083_s27 = scalar_select %p921_p11, 1, 0 }
  0x1a   : > { %172 = sbr.rel (!%p904_p4) target bundleno = 57 (0x39), region = 20  ;;  %s173_s28 = sand.u32 (%p904_p4), 1, %s817_s14  }
  0x1b   : > { %s538_s29 = sshll.u32 (%p904_p4), %s173_s28, 3  ;;  %s929_s30 = scalar_lea.sflag (%p904_p4), [#allocation3], %s173_s28 }
  0x1c   : > { %s177_s4 = scalar_lea.vmem (%p904_p4), [#allocation2], %s538_s29 }
  0x21   : > { %183 = vsyncadd %s929_s30, 96  ;;  %s539_s5 = sshll.u32 %s825_s16, 5  ;;  %s189_s6 = sshll.u32 %s177_s4, 4  ;;  %s190_s6 = int_to_ptr.vmem [resolvable:$true] %s189_s6 }
  0x22   : > { %s936_s9 = scalar_lea.hbm %s1076_s0, %s539_s5  ;;  %s697_s19 = scalar_lea.hbm %s1076_s0, 192 }
  0x23   : > { %s695_s10 = scalar_lea.hbm %s936_s9, 32  ;;  %p698_p0 = scmp.lt.u32.totalorder %s936_s9, %s1076_s0 }
  0x24   : > { %p696_p13 = scmp.ne.s32.totalorder %s936_s9, %s695_s10  ;;  %p699_p1 = scmp.lt.u32.totalorder %s697_s19, %s695_s10 }
  0x25   : > { %p701_p3 = scmp.lt.u32.totalorder %s695_s10, %s936_s9 }
  0x26   : > { %p700_p2 = por %p699_p1, %p698_p0 }
  0x28   : > { %p702_p5 = por %p701_p3, %p700_p2 }
  0x2a   : > { %p703_p6 = pnand %p702_p5, %p696_p13 }
  0x2c   : > { %706 = shalt.err (!%p703_p6)
}
  0x2d   : > { %s707_s28 = scalar_lea.vmem %s190_s6, 32  ;;  %s831_s29 = smov [#allocation2]  }
  0x2e   : > { %p708_p7 = scmp.ne.s32.totalorder %s190_s6, %s707_s28  ;;  %s709_s4 = sshll.u32 %s831_s29, 4  ;;  %s710_s4 = int_to_ptr.vmem [resolvable:$false] %s709_s4 }
  0x2f   : > { %s711_s5 = scalar_lea.vmem %s710_s4, 256  ;;  %p712_p10 = scmp.lt.s32.totalorder %s190_s6, %s710_s4 }
  0x30   : > { %p713_p12 = scmp.lt.s32.totalorder %s711_s5, %s707_s28 }
  0x32   : > { %p714_p11 = por %p713_p12, %p712_p10 }
  0x34   : > { %p715_p9 = pnand %p714_p11, %p708_p7 }
  0x36   : > { %718 = shalt.err (!%p715_p9)
}
  0x37   : > { %s832_s7 = smov 32   ;;  %s833_s8 = smov 2  }
  0x38   : > { %195 = dma.hbm_to_vmem [thread:$0]  %s936_s9, 32, %s190_s6, %s929_s30, %s832_s7, %s832_s7, %s833_s8  }
  0x39 PF: > { %s199_s10 = sand.u32 1, %s817_s14   ;;  %s552_s11 = sshll.u32 %s825_s16, 11 }
  0x3a   : > { %s540_s18 = sshll.u32 %s199_s10, 7  ;;  %s955_s23 = scalar_lea.hbm %s1077_s1, %s552_s11 }
  0x3b   : > { %s203_s28 = scalar_lea.vmem [#allocation5], %s540_s18  ;;  %s959_s30 = scalar_lea.sflag [#allocation6], %s199_s10 }
  0x3c   : > { %s211_s29 = sshll.u32 %s203_s28, 4  ;;  %s719_s6 = scalar_lea.hbm %s955_s23, 2048  ;;  %s957_s29 = int_to_ptr.vmem [resolvable:$true] %s211_s29 }
  0x3d   : > { %p720_p9 = scmp.ne.s32.totalorder %s955_s23, %s719_s6  ;;  %s723_s5 = scalar_lea.hbm %s1077_s1, 12288 }
  0x3e   : > { %p724_p0 = scmp.lt.u32.totalorder %s955_s23, %s1077_s1  ;;  %p725_p1 = scmp.lt.u32.totalorder %s723_s5, %s719_s6 }
  0x3f   : > { %p721_p11 = pnand %p720_p9, %p904_p4  ;;  %p727_p3 = scmp.lt.u32.totalorder %s719_s6, %s955_s23 }
  0x40   : > { %p726_p2 = por %p725_p1, %p724_p0 }
  0x41   : > { %p722_p13 = pneg %p721_p11 }
  0x42   : > { %p728_p5 = por %p727_p3, %p726_p2 }
  0x44   : > { %p729_p6 = pnand %p728_p5, %p722_p13 }
  0x46   : > { %732 = shalt.err (!%p729_p6)
}
  0x47   : > { %s733_s10 = scalar_lea.vmem %s957_s29, 2048  ;;  %s834_s11 = smov [#allocation5]  }
  0x48   : > { %p734_p7 = scmp.ne.s32.totalorder %s957_s29, %s733_s10  ;;  %s737_s18 = sshll.u32 %s834_s11, 4  ;;  %s738_s18 = int_to_ptr.vmem [resolvable:$false] %s737_s18 }
  0x49   : > { %s739_s19 = scalar_lea.vmem %s738_s18, 4096  ;;  %p740_p9 = scmp.lt.s32.totalorder %s957_s29, %s738_s18 }
  0x4a   : > { %p735_p10 = pnand %p734_p7, %p904_p4  ;;  %p741_p11 = scmp.lt.s32.totalorder %s739_s19, %s733_s10 }
  0x4c   : > { %p736_p12 = pneg %p735_p10  ;;  %p742_p0 = por %p741_p11, %p740_p9 }
  0x4e   : > { %p743_p1 = pnand %p742_p0, %p736_p12 }
  0x50   : > { %746 = shalt.err (!%p743_p1)
}
  0x51   : > { %s835_s21 = smov 128   ;;  %s836_s28 = smov 8  }
  0x52   : > { %629 = dma.hbm_to_vmem [thread:$0]  (%p904_p4), %s955_s23, 2048, %s957_s29, %s959_s30, %s835_s21, %s835_s21, %s836_s28  }
  0x53 PF: > { %p543_p13 = scmp.ge.s32.totalorder %s829_s17, 1  ;;  %p228_p2 = scmp.lt.s32.totalorder %s829_s17, 7 }
  0x55   : > { %p229_p3 = pnand %p543_p13, %p228_p2 }
  0x56   : > { %s986_s6 = sand.u32 (!%p229_p3), 1, %s813_s13  }
  0x57   : > { %232 = sbr.rel (%p229_p3) target bundleno = 372 (0x174), region = 32  ;;  %s544_s9 = sshll.u32 (!%p229_p3), %s986_s6, 3 }
  0x58   : > { %s235_s4 = scalar_lea.sflag (!%p229_p3), [#allocation3], %s986_s6  ;;  %s992_s5 = scalar_lea.vmem (!%p229_p3), [#allocation2], %s544_s9 }
  0x5e   : > { %796 = dma.done.wait (%p910_p8), %s235_s4, 128  }
  0x5f   : > { %798 = vsyncadd (%p910_p8), %s235_s4, 4294967168  ;;  %s545_s22 = sshll.u32 %s986_s6, 7  ;;  %s244_s23 = scalar_lea.sflag [#allocation6], %s986_s6 }
  0x60   : > { %s1000_s29 = scalar_lea.vmem [#allocation5], %s545_s22 }
  0x61   : > { %800 = dma.done.wait (%p910_p8), %s244_s23, 2048  }
  0x62   : > { %802 = vsyncadd (%p910_p8), %s244_s23, 4294965248  ;;  %v837_v0 = vmov 0.0|0.0   ;;  %vm838_vm0 = vmmov 0   ;;  %v839_v1 = vmov 0.0   ;;  %v294_v2 = vld [vmem:[%s1000_s29] sm:$0xff]  ;;  %v295_v3 = vld [vmem:[%s1000_s29 + $0x8] sm:$0xff] }
  0x63   : > { %605 = vmatprep.subr.bf16.mxu0 %v837_v0  ;;  %602 = vmatprep.mubr.msk.f32.mxu0 %vm838_vm0, %v839_v1  ;;  %v296_v4 = vld [vmem:[%s1000_s29 + $0x10] sm:$0xff]  ;;  %v606_v5 = vpack.c.bf16 %v295_v3, %v294_v2  ;;  %v297_v6 = vld [vmem:[%s1000_s29 + $0x18] sm:$0xff]  ;;  %v298_v8 = vld [vmem:[%s1000_s29 + $0x20] sm:$0xff]  ;;  %p284_p4 = scmp.lt.s32.totalorder %s821_s15, 5  ;;  %s280_s10 = scalar_lea.vmem [#allocation7], %s544_s9 }
  0x64   : > { %v609_v7 = vpack.c.bf16 %v297_v6, %v296_v4  ;;  %v299_v9 = vld [vmem:[%s1000_s29 + $0x28] sm:$0xff]  ;;  %v300_v11 = vld [vmem:[%s1000_s29 + $0x30] sm:$0xff]  ;;  %v301_v12 = vld [vmem:[%s1000_s29 + $0x38] sm:$0xff]  ;;  %s389_s11 = scalar_lea.sflag [#allocation4], %s986_s6  ;;  %p1084_p8 = scmp.ne.s32.totalorder %s1082_s25, 0 }
  0x65   : > { %607 = vmatpush3.bf16.msra.mxu0 %v606_v5  ;;  %v612_v10 = vpack.c.bf16 %v299_v9, %v298_v8  ;;  %v615_v13 = vpack.c.bf16 %v301_v12, %v300_v11  ;;  %v302_v14 = vld [vmem:[%s1000_s29 + $0x40] sm:$0xff]  ;;  %v303_v15 = vld [vmem:[%s1000_s29 + $0x48] sm:$0xff]  ;;  %v304_v17 = vld [vmem:[%s1000_s29 + $0x50] sm:$0xff]  ;;  %s285_s24 = scalar_select %p284_p4, %s821_s15, 5 }
  0x66   : > { %608 = vmatprep.subr.bf16.mxu0 %v837_v0  ;;  %v618_v16 = vpack.c.bf16 %v303_v15, %v302_v14  ;;  %v305_v18 = vld [vmem:[%s1000_s29 + $0x58] sm:$0xff]  ;;  %v306_v20 = vld [vmem:[%s1000_s29 + $0x60] sm:$0xff]  ;;  %v307_v21 = vld [vmem:[%s1000_s29 + $0x68] sm:$0xff] }
  0x67   : > { %v621_v19 = vpack.c.bf16 %v305_v18, %v304_v17  ;;  %v624_v22 = vpack.c.bf16 %v307_v21, %v306_v20  ;;  %v308_v23 = vld [vmem:[%s1000_s29 + $0x70] sm:$0xff]  ;;  %v309_v24 = vld [vmem:[%s1000_s29 + $0x78] sm:$0xff]  ;;  %s289_s8 = scalar_lea.vmem %s1078_s2, %s285_s24 }
  0x68   : > { %v627_v25 = vpack.c.bf16 %v309_v24, %v308_v23  ;;  %v293_v26 = vld [vmem:[%s992_s5] sm:$0xff] }
  0x69   : > { %610 = vmatpush3.bf16.msra.mxu0 %v609_v7  ;;  %v547_v27 = vld [vmem:[%s289_s8] ss:$0 sm:$0xff] }
  0x6a   : > { %611 = vmatprep.subr.bf16.mxu0 %v837_v0 }
  0x6d   : > { %613 = vmatpush3.bf16.msra.mxu0 %v612_v10 }
  0x6e   : > { %614 = vmatprep.subr.bf16.mxu0 %v837_v0 }
  0x71   : > { %616 = vmatpush3.bf16.msra.mxu0 %v615_v13 }
  0x72   : > { %617 = vmatprep.subr.bf16.mxu0 %v837_v0 }
  0x75   : > { %619 = vmatpush3.bf16.msra.mxu0 %v618_v16 }
  0x76   : > { %620 = vmatprep.subr.bf16.mxu0 %v837_v0 }
  0x79   : > { %622 = vmatpush3.bf16.msra.mxu0 %v621_v19 }
  0x7a   : > { %623 = vmatprep.subr.bf16.mxu0 %v837_v0 }
  0x7d   : > { %625 = vmatpush3.bf16.msra.mxu0 %v624_v22 }
  0x7e   : > { %626 = vmatprep.subr.bf16.mxu0 %v837_v0 }
  0x81   : > { %628 = vmatpush3.bf16.msra.mxu0 %v627_v25 }
  0x84   : > { %603 = vmatmul.mubr.f32.vlgmr.msra.gmra.mrb[0].mxu0 %v293_v26 }
 0x154   : > { %395 = sbr.rel (!%p1084_p8) target bundleno = 372 (0x174), region = 44 }
 0x157   : > { %v383_v28 = vpop.f32.mrb[0].mxu0 }
 0x158   : > { %v384_v29 = vadd.f32 %v547_v27, %v383_v28  ;;  %v604_v30 = vpop.f32.mrb[1].mxu0 }
 0x15a   : > { %387 = vst [vmem:[%s280_s10] sm:$0xff] %v384_v29 }
 0x15b   : > { %401 = vsyncadd %s389_s11, 96  ;;  %s549_s18 = sshll.u32 %s821_s15, 5  ;;  %s408_s19 = sshll.u32 %s280_s10, 4  ;;  %s409_s19 = int_to_ptr.vmem [resolvable:$true] %s408_s19 }
 0x15c   : > { %s1039_s4 = scalar_lea.hbm %s1079_s3, %s549_s18  ;;  %s747_s5 = scalar_lea.vmem %s409_s19, 32 }
 0x15d   : > { %p748_p5 = scmp.ne.s32.totalorder %s409_s19, %s747_s5  ;;  %s840_s9 = smov [#allocation7]  }
 0x15e   : > { %s749_s22 = sshll.u32 %s840_s9, 4  ;;  %s750_s22 = int_to_ptr.vmem [resolvable:$false] %s749_s22 }
 0x15f   : > { %s751_s23 = scalar_lea.vmem %s750_s22, 256  ;;  %p752_p6 = scmp.lt.s32.totalorder %s409_s19, %s750_s22 }
 0x160   : > { %p753_p7 = scmp.lt.s32.totalorder %s751_s23, %s747_s5 }
 0x162   : > { %p754_p10 = por %p753_p7, %p752_p6 }
 0x164   : > { %p755_p12 = pnand %p754_p10, %p748_p5 }
 0x166   : > { %758 = shalt.err (!%p755_p12)
}
 0x167   : > { %s759_s15 = scalar_lea.hbm %s1039_s4, 32  ;;  %s761_s24 = scalar_lea.hbm %s1079_s3, 192 }
 0x168   : > { %p760_p9 = scmp.ne.s32.totalorder %s1039_s4, %s759_s15  ;;  %p762_p11 = scmp.lt.u32.totalorder %s1039_s4, %s1079_s3 }
 0x169   : > { %p763_p0 = scmp.lt.u32.totalorder %s761_s24, %s759_s15  ;;  %p765_p13 = scmp.lt.u32.totalorder %s759_s15, %s1039_s4 }
 0x16b   : > { %p764_p1 = por %p763_p0, %p762_p11 }
 0x16d   : > { %p766_p2 = por %p765_p13, %p764_p1 }
 0x16f   : > { %p767_p3 = pnand %p766_p2, %p760_p9 }
 0x171   : > { %770 = shalt.err (!%p767_p3)
}
 0x172   : > { %s841_s8 = smov 32   ;;  %s842_s10 = smov 2  }
 0x173   : > { %414 = dma.vmem_to_hbm [thread:$0]  %s409_s19, 32, %s1039_s4, %s389_s11, %s841_s8, %s841_s8, %s842_s10  }
 0x174 PF: > { %p637_p4 = scmp.ge.s32.totalorder %s829_s17, 2  ;;  %s423_s18 = sand.u32 1, %s809_s12  }
 0x175   : > { %p1085_p8 = scmp.ne.s32.totalorder %s1083_s27, 0  ;;  %s424_s21 = scalar_lea.sflag [#allocation4], %s423_s18 }
 0x177   : > { %p634_p5 = pnand %p637_p4, %p1085_p8 }
 0x179   : > { %804 = dma.done.wait (!%p634_p5), %s424_s21, 128  }
 0x17a   : > { %806 = vsyncadd (!%p634_p5), %s424_s21, 4294967168  ;;  %s22_s17 = sadd.s32 1, %s829_s17   ;;  %s1086_s12 = smov %s813_s13 }
 0x17b   : > { %p19_p6 = scmp.ge.s32.totalorder %s22_s17, 8   ;;  %s1087_s13 = smov %s817_s14 }
 0x17c   : > { %s1088_s14 = smov %s919_s26  ;;  %s1089_s15 = smov %s825_s16 }
 0x17d   : > { %s1090_s16 = smov %s1092_s20  ;;  %21 = sbr.rel (!%p19_p6) target bundleno = 8 (0x8), region = 93 }
 0x184   :  { %429 = vsyncpa [#allocation3], 1 }
 0x185   :  { %431 = vsyncpa [#allocation3 + $0x1], 1 }
 0x186   :  { %432 = vsyncpa [#allocation6], 1 }
 0x187   :  { %434 = vsyncpa [#allocation6 + $0x1], 1 }
 0x188   :  { %435 = vsyncpa [#allocation4], 1 }
 0x189   :  { %437 = vsyncpa [#allocation4 + $0x1], 1 }

</bundles_post_ra>
